<compile_context>
chip_gen: v7x
topology: tpu7x:2x2x1
jax: 0.10.0
libtpu: 0.0.40
codegen_flags: <defaults>
</compile_context>

<pallas_src>
import functools

import jax
import jax.numpy as jnp
from jax import lax
from jax.experimental import pallas as pl
from jax.experimental.pallas import tpu as pltpu


def _round_up(n: int, m: int) -> int:
    return (n + m - 1) // m * m


def _tds_fc_kernel(x_ref, w1_ref, b1_ref, w2_ref, b2_ref, g_ref, beta_ref,
                   o_ref, *, eps: float, valid_f: int):
    # x_ref: (block_rows, Fp); weights pre-transposed so y = x @ W + b.
    x = x_ref[...].astype(jnp.float32)

    # Linear1 + ReLU (padded weight columns/bias are zero -> padded h cols = 0).
    h = jnp.dot(x, w1_ref[...], preferred_element_type=jnp.float32) + b1_ref[...]
    h = jnp.maximum(h, 0.0)

    # TODO(synk): nn.Dropout(p=0.2) is identity in eval mode; training-mode
    # dropout (pltpu.prng_random_bits) cannot match torch RNG bit-for-bit.

    # Linear2 (padded output columns are exactly 0 by construction).
    y = jnp.dot(h, w2_ref[...], preferred_element_type=jnp.float32) + b2_ref[...]

    # LayerNorm over the real feature dim only (population variance, eps=1e-5).
    f_pad = y.shape[-1]
    inv_f = 1.0 / float(valid_f)
    mean = jnp.sum(y, axis=-1, keepdims=True) * inv_f      # padded cols are 0
    centered = y - mean
    if valid_f != f_pad:
        lane = lax.broadcasted_iota(jnp.int32, y.shape, dimension=1)
        centered = jnp.where(lane < valid_f, centered, 0.0)
    var = jnp.sum(centered * centered, axis=-1, keepdims=True) * inv_f
    normed = centered * lax.rsqrt(var + eps)
    o_ref[...] = (normed * g_ref[...] + beta_ref[...]).astype(o_ref.dtype)


def prepare_params(params):
    """One-time prep (outside the per-call path): transpose Linear weights so
    the kernel computes x @ W (+ b), matching torch's y = x @ W.T + b."""
    return {
        "w1_t": jnp.asarray(params["w1"]).T,
        "w2_t": jnp.asarray(params["w2"]).T,
        "b1": jnp.asarray(params["b1"]),
        "b2": jnp.asarray(params["b2"]),
        "gamma": jnp.asarray(params["gamma"]),
        "beta": jnp.asarray(params["beta"]),
    }


def tds_fully_connected_block_no_skip(x, prepared, *, block_rows=512, eps=1e-5):
    """x: (T, N, F) float32. prepared: output of prepare_params()."""
    T, N, F = x.shape
    rows = T * N

    # Lane-dense feature padding and row padding so the grid tiles evenly.
    Fp = max(_round_up(F, 128), 128)
    block_rows = max(8, min(block_rows, _round_up(rows, 8)))
    block_rows = _round_up(block_rows, 8)
    rows_p = _round_up(rows, block_rows)

    x2d = x.reshape(rows, F)
    x2d = jnp.pad(x2d, ((0, rows_p - rows), (0, Fp - F)))

    def pad_mat(w):   # (F, F) -> (Fp, Fp), zero padded
        return jnp.pad(w, ((0, Fp - F), (0, Fp - F)))

    def pad_vec(v):   # (F,) -> (1, Fp), zero padded
        return jnp.pad(v.reshape(1, F), ((0, 0), (0, Fp - F)))

    w1_t = pad_mat(prepared["w1_t"])
    w2_t = pad_mat(prepared["w2_t"])
    b1 = pad_vec(prepared["b1"])
    b2 = pad_vec(prepared["b2"])
    gamma = pad_vec(prepared["gamma"])
    beta = pad_vec(prepared["beta"])

    grid = (rows_p // block_rows,)

    # VMEM budget: resident weights (single-buffered) + double-buffered in/out
    # row tiles + fp32 intermediates + headroom.  Clamp to [32 MiB, 64 MiB] so
    # it is valid on every generation (v7x physical VMEM is 64 MiB).
    weight_bytes = 2 * Fp * Fp * 4
    tile_bytes = block_rows * Fp * 4
    need = weight_bytes + 4 * tile_bytes + 2 * tile_bytes
    vmem_limit = int(min(64 * 1024 * 1024,
                         max(32 * 1024 * 1024, (need * 3) // 2)))

    kernel = functools.partial(_tds_fc_kernel, eps=eps, valid_f=F)
    out_shape = jax.ShapeDtypeStruct((rows_p, Fp), x.dtype)

    def call(single_buffer_params):
        if single_buffer_params:
            # Constant index_map -> no re-DMA per step; single buffer halves
            # the resident weight VMEM.
            def const_spec(shape):
                return pl.BlockSpec(shape, lambda i: (0, 0),
                                    pipeline_mode=pl.Buffered(1))
        else:
            def const_spec(shape):
                return pl.BlockSpec(shape, lambda i: (0, 0))

        return pl.pallas_call(
            kernel,
            out_shape=out_shape,
            grid=grid,
            in_specs=[
                pl.BlockSpec((block_rows, Fp), lambda i: (i, 0)),  # x rows
                const_spec((Fp, Fp)),                              # w1^T
                const_spec((1, Fp)),                               # b1
                const_spec((Fp, Fp)),                              # w2^T
                const_spec((1, Fp)),                               # b2
                const_spec((1, Fp)),                               # gamma
                const_spec((1, Fp)),                               # beta
            ],
            out_specs=pl.BlockSpec((block_rows, Fp), lambda i: (i, 0)),
            compiler_params=pltpu.CompilerParams(
                dimension_semantics=("parallel",),
                vmem_limit_bytes=vmem_limit),
        )(x2d, w1_t, b1, w2_t, b2, gamma, beta)

    try:
        out2d = call(True)
    except Exception:
        # pipeline_mode=pl.Buffered(1) unsupported on this jax version;
        # fall back to default double buffering (semantics identical).
        out2d = call(False)

    return out2d[:rows, :F].reshape(T, N, F)


def _init_params(key, num_features):
    """Deterministic init matching the shapes of the torch module."""
    k1, k2, k3, k4 = jax.random.split(key, 4)
    bound = 1.0 / jnp.sqrt(num_features)
    return {
        "w1": jax.random.uniform(k1, (num_features, num_features),
                                 jnp.float32, -bound, bound),
        "b1": jax.random.uniform(k2, (num_features,), jnp.float32,
                                 -bound, bound),
        "w2": jax.random.uniform(k3, (num_features, num_features),
                                 jnp.float32, -bound, bound),
        "b2": jax.random.uniform(k4, (num_features,), jnp.float32,
                                 -bound, bound),
        "gamma": jnp.ones((num_features,), jnp.float32),
        "beta": jnp.zeros((num_features,), jnp.float32),
    }


def _reference(x, params, eps=1e-5):
    h = jnp.maximum(x @ params["w1"].T + params["b1"], 0.0)
    y = h @ params["w2"].T + params["b2"]
    mean = jnp.mean(y, axis=-1, keepdims=True)
    var = jnp.mean((y - mean) ** 2, axis=-1, keepdims=True)
    return (y - mean) / jnp.sqrt(var + eps) * params["gamma"] + params["beta"]


if __name__ == "__main__":
    key = jax.random.PRNGKey(0)
    kx, kx2, kp = jax.random.split(key, 3)

    F = 32                                   # num_features
    params = _init_params(kp, F)
    prepared = prepare_params(params)

    # Test 1: small shape consistent with the module (T, N, num_features).
    T, N = 8, 2
    x = jax.random.normal(kx, (T, N, F), jnp.float32)
    out = tds_fully_connected_block_no_skip(x, prepared)
    out = jax.block_until_ready(out)
    ref = _reference(x, params)
    assert out.shape == (T, N, F)
    assert jnp.allclose(out, ref, atol=1e-4, rtol=1e-4), "mismatch vs reference"

    # Test 2: ragged row count exercising row padding and a multi-step grid.
    T2, N2 = 100, 3
    x2 = jax.random.normal(kx2, (T2, N2, F), jnp.float32)
    out2 = tds_fully_connected_block_no_skip(x2, prepared, block_rows=128)
    out2 = jax.block_until_ready(out2)
    ref2 = _reference(x2, params)
    assert out2.shape == (T2, N2, F)
    assert jnp.allclose(out2, ref2, atol=1e-4, rtol=1e-4), "mismatch vs reference (ragged)"

    print("KERNEL_OK")
</pallas_src>

<mosaic_0001>
module attributes {stable_mosaic.version = 11 : i64} {
  func.func @_tds_fc_kernel(%arg0: i32, %arg1: memref<16x128xf32, #tpu.memory_space<vmem>>, %arg2: memref<128x128xf32, #tpu.memory_space<vmem>>, %arg3: memref<1x128xf32, #tpu.memory_space<vmem>>, %arg4: memref<128x128xf32, #tpu.memory_space<vmem>>, %arg5: memref<1x128xf32, #tpu.memory_space<vmem>>, %arg6: memref<1x128xf32, #tpu.memory_space<vmem>>, %arg7: memref<1x128xf32, #tpu.memory_space<vmem>>, %arg8: memref<16x128xf32, #tpu.memory_space<vmem>>) attributes {dimension_semantics = [#tpu.dimension_semantics<parallel>], iteration_bounds = array<i64: 1>, scalar_prefetch = 0 : i64, scratch_operands = 0 : i64, tpu.core_type = #tpu.core_type<tc>, window_params = [{transform_indices = @transform_0, window_bounds = array<i64: 16, 128>}, {pipeline_mode = #tpu.pipeline_mode<synchronous>, transform_indices = @transform_1, window_bounds = array<i64: 128, 128>}, {pipeline_mode = #tpu.pipeline_mode<synchronous>, transform_indices = @transform_2, window_bounds = array<i64: 1, 128>}, {pipeline_mode = #tpu.pipeline_mode<synchronous>, transform_indices = @transform_3, window_bounds = array<i64: 128, 128>}, {pipeline_mode = #tpu.pipeline_mode<synchronous>, transform_indices = @transform_4, window_bounds = array<i64: 1, 128>}, {pipeline_mode = #tpu.pipeline_mode<synchronous>, transform_indices = @transform_5, window_bounds = array<i64: 1, 128>}, {pipeline_mode = #tpu.pipeline_mode<synchronous>, transform_indices = @transform_6, window_bounds = array<i64: 1, 128>}, {transform_indices = @transform_7, window_bounds = array<i64: 16, 128>}]} {
    %c0 = arith.constant 0 : index
    %c0_0 = arith.constant 0 : index
    %0 = vector.load %arg1[%c0, %c0_0] : memref<16x128xf32, #tpu.memory_space<vmem>>, vector<16x128xf32>
    %c0_1 = arith.constant 0 : index
    %c0_2 = arith.constant 0 : index
    %1 = vector.load %arg2[%c0_1, %c0_2] : memref<128x128xf32, #tpu.memory_space<vmem>>, vector<128x128xf32>
    %cst = arith.constant dense<0.000000e+00> : vector<16x128xf32>
    %2 = tpu.matmul %0, %1, %cst {dimension_numbers = #tpu.dot_dimension_numbers<[1], [0], [0], [1], [0, 0, 1, 1], [], []>} : vector<16x128xf32>, vector<128x128xf32>, vector<16x128xf32> -> vector<16x128xf32>
    %c0_3 = arith.constant 0 : index
    %c0_4 = arith.constant 0 : index
    %3 = vector.load %arg3[%c0_3, %c0_4] : memref<1x128xf32, #tpu.memory_space<vmem>>, vector<1x128xf32>
    %4 = vector.broadcast %3 : vector<1x128xf32> to vector<16x128xf32>
    %5 = arith.addf %2, %4 : vector<16x128xf32>
    %cst_5 = arith.constant 0.000000e+00 : f32
    %6 = vector.broadcast %cst_5 : f32 to vector<16x128xf32>
    %7 = arith.maximumf %5, %6 : vector<16x128xf32>
    %c0_6 = arith.constant 0 : index
    %c0_7 = arith.constant 0 : index
    %8 = vector.load %arg4[%c0_6, %c0_7] : memref<128x128xf32, #tpu.memory_space<vmem>>, vector<128x128xf32>
    %cst_8 = arith.constant dense<0.000000e+00> : vector<16x128xf32>
    %9 = tpu.matmul %7, %8, %cst_8 {dimension_numbers = #tpu.dot_dimension_numbers<[1], [0], [0], [1], [0, 0, 1, 1], [], []>} : vector<16x128xf32>, vector<128x128xf32>, vector<16x128xf32> -> vector<16x128xf32>
    %c0_9 = arith.constant 0 : index
    %c0_10 = arith.constant 0 : index
    %10 = vector.load %arg5[%c0_9, %c0_10] : memref<1x128xf32, #tpu.memory_space<vmem>>, vector<1x128xf32>
    %11 = vector.broadcast %10 : vector<1x128xf32> to vector<16x128xf32>
    %12 = arith.addf %9, %11 : vector<16x128xf32>
    %cst_11 = arith.constant dense<0.000000e+00> : vector<16xf32>
    %13 = vector.multi_reduction <add>, %12, %cst_11 [1] : vector<16x128xf32> to vector<16xf32>
    %14 = vector.shape_cast %13 : vector<16xf32> to vector<16x1xf32>
    %cst_12 = arith.constant 3.125000e-02 : f32
    %15 = vector.broadcast %cst_12 : f32 to vector<16x1xf32>
    %16 = arith.mulf %14, %15 : vector<16x1xf32>
    %17 = vector.broadcast %16 : vector<16x1xf32> to vector<16x128xf32>
    %18 = arith.subf %12, %17 : vector<16x128xf32>
    %19 = tpu.iota {dimensions = array<i32: 1>} : vector<16x128xi32>
    %c32_i32 = arith.constant 32 : i32
    %20 = vector.broadcast %c32_i32 : i32 to vector<16x128xi32>
    %21 = arith.cmpi slt, %19, %20 : vector<16x128xi32>
    %cst_13 = arith.constant 0.000000e+00 : f32
    %22 = vector.broadcast %cst_13 : f32 to vector<16x128xf32>
    %23 = arith.select %21, %18, %22 : vector<16x128xi1>, vector<16x128xf32>
    %24 = arith.mulf %23, %23 : vector<16x128xf32>
    %cst_14 = arith.constant dense<0.000000e+00> : vector<16xf32>
    %25 = vector.multi_reduction <add>, %24, %cst_14 [1] : vector<16x128xf32> to vector<16xf32>
    %26 = vector.shape_cast %25 : vector<16xf32> to vector<16x1xf32>
    %cst_15 = arith.constant 3.125000e-02 : f32
    %27 = vector.broadcast %cst_15 : f32 to vector<16x1xf32>
    %28 = arith.mulf %26, %27 : vector<16x1xf32>
    %cst_16 = arith.constant 9.99999974E-6 : f32
    %29 = vector.broadcast %cst_16 : f32 to vector<16x1xf32>
    %30 = arith.addf %28, %29 : vector<16x1xf32>
    %31 = math.rsqrt %30 : vector<16x1xf32>
    %32 = vector.broadcast %31 : vector<16x1xf32> to vector<16x128xf32>
    %33 = arith.mulf %23, %32 : vector<16x128xf32>
    %c0_17 = arith.constant 0 : index
    %c0_18 = arith.constant 0 : index
    %34 = vector.load %arg6[%c0_17, %c0_18] : memref<1x128xf32, #tpu.memory_space<vmem>>, vector<1x128xf32>
    %35 = vector.broadcast %34 : vector<1x128xf32> to vector<16x128xf32>
    %36 = arith.mulf %33, %35 : vector<16x128xf32>
    %c0_19 = arith.constant 0 : index
    %c0_20 = arith.constant 0 : index
    %37 = vector.load %arg7[%c0_19, %c0_20] : memref<1x128xf32, #tpu.memory_space<vmem>>, vector<1x128xf32>
    %38 = vector.broadcast %37 : vector<1x128xf32> to vector<16x128xf32>
    %39 = arith.addf %36, %38 : vector<16x128xf32>
    %c0_21 = arith.constant 0 : index
    %c0_22 = arith.constant 0 : index
    %40 = vector.load %arg8[%c0_21, %c0_22] : memref<16x128xf32, #tpu.memory_space<vmem>>, vector<16x128xf32>
    tpu.vector_store %arg8[%c0_21, %c0_22], %39 {strides = array<i32>} : memref<16x128xf32, #tpu.memory_space<vmem>>, vector<16x128xf32>,
    return
  }
  func.func @transform_0(%arg0: i32) -> (i32, i32) {
    %c0_i32 = arith.constant 0 : i32
    %c0_i32_0 = arith.constant 0 : i32
    return %arg0, %c0_i32 : i32, i32
  }
  func.func @transform_1(%arg0: i32) -> (i32, i32) {
    %c0_i32 = arith.constant 0 : i32
    %c0_i32_0 = arith.constant 0 : i32
    %c0_i32_1 = arith.constant 0 : i32
    return %c0_i32, %c0_i32_0 : i32, i32
  }
  func.func @transform_2(%arg0: i32) -> (i32, i32) {
    %c0_i32 = arith.constant 0 : i32
    %c0_i32_0 = arith.constant 0 : i32
    %c0_i32_1 = arith.constant 0 : i32
    return %c0_i32, %c0_i32_0 : i32, i32
  }
  func.func @transform_3(%arg0: i32) -> (i32, i32) {
    %c0_i32 = arith.constant 0 : i32
    %c0_i32_0 = arith.constant 0 : i32
    %c0_i32_1 = arith.constant 0 : i32
    return %c0_i32, %c0_i32_0 : i32, i32
  }
  func.func @transform_4(%arg0: i32) -> (i32, i32) {
    %c0_i32 = arith.constant 0 : i32
    %c0_i32_0 = arith.constant 0 : i32
    %c0_i32_1 = arith.constant 0 : i32
    return %c0_i32, %c0_i32_0 : i32, i32
  }
  func.func @transform_5(%arg0: i32) -> (i32, i32) {
    %c0_i32 = arith.constant 0 : i32
    %c0_i32_0 = arith.constant 0 : i32
    %c0_i32_1 = arith.constant 0 : i32
    return %c0_i32, %c0_i32_0 : i32, i32
  }
  func.func @transform_6(%arg0: i32) -> (i32, i32) {
    %c0_i32 = arith.constant 0 : i32
    %c0_i32_0 = arith.constant 0 : i32
    %c0_i32_1 = arith.constant 0 : i32
    return %c0_i32, %c0_i32_0 : i32, i32
  }
  func.func @transform_7(%arg0: i32) -> (i32, i32) {
    %c0_i32 = arith.constant 0 : i32
    %c0_i32_0 = arith.constant 0 : i32
    return %arg0, %c0_i32 : i32, i32
  }
}

module attributes {stable_mosaic.version = 11 : i64} {
  func.func @_tds_fc_kernel(%arg0: i32, %arg1: memref<16x128xf32, #tpu.memory_space<vmem>>, %arg2: memref<128x128xf32, #tpu.memory_space<vmem>>, %arg3: memref<1x128xf32, #tpu.memory_space<vmem>>, %arg4: memref<128x128xf32, #tpu.memory_space<vmem>>, %arg5: memref<1x128xf32, #tpu.memory_space<vmem>>, %arg6: memref<1x128xf32, #tpu.memory_space<vmem>>, %arg7: memref<1x128xf32, #tpu.memory_space<vmem>>, %arg8: memref<16x128xf32, #tpu.memory_space<vmem>>) attributes {dimension_semantics = [#tpu.dimension_semantics<parallel>], iteration_bounds = array<i64: 1>, scalar_prefetch = 0 : i64, scratch_operands = 0 : i64, tpu.core_type = #tpu.core_type<tc>, window_params = [{transform_indices = @transform_0, window_bounds = array<i64: 16, 128>}, {pipeline_mode = #tpu.pipeline_mode<synchronous>, transform_indices = @transform_1, window_bounds = array<i64: 128, 128>}, {pipeline_mode = #tpu.pipeline_mode<synchronous>, transform_indices = @transform_2, window_bounds = array<i64: 1, 128>}, {pipeline_mode = #tpu.pipeline_mode<synchronous>, transform_indices = @transform_3, window_bounds = array<i64: 128, 128>}, {pipeline_mode = #tpu.pipeline_mode<synchronous>, transform_indices = @transform_4, window_bounds = array<i64: 1, 128>}, {pipeline_mode = #tpu.pipeline_mode<synchronous>, transform_indices = @transform_5, window_bounds = array<i64: 1, 128>}, {pipeline_mode = #tpu.pipeline_mode<synchronous>, transform_indices = @transform_6, window_bounds = array<i64: 1, 128>}, {transform_indices = @transform_7, window_bounds = array<i64: 16, 128>}]} {
    %c0 = arith.constant 0 : index
    %c0_0 = arith.constant 0 : index
    %0 = vector.load %arg1[%c0, %c0_0] : memref<16x128xf32, #tpu.memory_space<vmem>>, vector<16x128xf32>
    %c0_1 = arith.constant 0 : index
    %c0_2 = arith.constant 0 : index
    %1 = vector.load %arg2[%c0_1, %c0_2] : memref<128x128xf32, #tpu.memory_space<vmem>>, vector<128x128xf32>
    %cst = arith.constant dense<0.000000e+00> : vector<16x128xf32>
    %2 = tpu.matmul %0, %1, %cst {dimension_numbers = #tpu.dot_dimension_numbers<[1], [0], [0], [1], [0, 0, 1, 1], [], []>} : vector<16x128xf32>, vector<128x128xf32>, vector<16x128xf32> -> vector<16x128xf32>
    %c0_3 = arith.constant 0 : index
    %c0_4 = arith.constant 0 : index
    %3 = vector.load %arg3[%c0_3, %c0_4] : memref<1x128xf32, #tpu.memory_space<vmem>>, vector<1x128xf32>
    %4 = vector.broadcast %3 : vector<1x128xf32> to vector<16x128xf32>
    %5 = arith.addf %2, %4 : vector<16x128xf32>
    %cst_5 = arith.constant 0.000000e+00 : f32
    %6 = vector.broadcast %cst_5 : f32 to vector<16x128xf32>
    %7 = arith.maximumf %5, %6 : vector<16x128xf32>
    %c0_6 = arith.constant 0 : index
    %c0_7 = arith.constant 0 : index
    %8 = vector.load %arg4[%c0_6, %c0_7] : memref<128x128xf32, #tpu.memory_space<vmem>>, vector<128x128xf32>
    %cst_8 = arith.constant dense<0.000000e+00> : vector<16x128xf32>
    %9 = tpu.matmul %7, %8, %cst_8 {dimension_numbers = #tpu.dot_dimension_numbers<[1], [0], [0], [1], [0, 0, 1, 1], [], []>} : vector<16x128xf32>, vector<128x128xf32>, vector<16x128xf32> -> vector<16x128xf32>
    %c0_9 = arith.constant 0 : index
    %c0_10 = arith.constant 0 : index
    %10 = vector.load %arg5[%c0_9, %c0_10] : memref<1x128xf32, #tpu.memory_space<vmem>>, vector<1x128xf32>
    %11 = vector.broadcast %10 : vector<1x128xf32> to vector<16x128xf32>
    %12 = arith.addf %9, %11 : vector<16x128xf32>
    %cst_11 = arith.constant dense<0.000000e+00> : vector<16xf32>
    %13 = vector.multi_reduction <add>, %12, %cst_11 [1] : vector<16x128xf32> to vector<16xf32>
    %14 = vector.shape_cast %13 : vector<16xf32> to vector<16x1xf32>
    %cst_12 = arith.constant 3.125000e-02 : f32
    %15 = vector.broadcast %cst_12 : f32 to vector<16x1xf32>
    %16 = arith.mulf %14, %15 : vector<16x1xf32>
    %17 = vector.broadcast %16 : vector<16x1xf32> to vector<16x128xf32>
    %18 = arith.subf %12, %17 : vector<16x128xf32>
    %19 = tpu.iota {dimensions = array<i32: 1>} : vector<16x128xi32>
    %c32_i32 = arith.constant 32 : i32
    %20 = vector.broadcast %c32_i32 : i32 to vector<16x128xi32>
    %21 = arith.cmpi slt, %19, %20 : vector<16x128xi32>
    %cst_13 = arith.constant 0.000000e+00 : f32
    %22 = vector.broadcast %cst_13 : f32 to vector<16x128xf32>
    %23 = arith.select %21, %18, %22 : vector<16x128xi1>, vector<16x128xf32>
    %24 = arith.mulf %23, %23 : vector<16x128xf32>
    %cst_14 = arith.constant dense<0.000000e+00> : vector<16xf32>
    %25 = vector.multi_reduction <add>, %24, %cst_14 [1] : vector<16x128xf32> to vector<16xf32>
    %26 = vector.shape_cast %25 : vector<16xf32> to vector<16x1xf32>
    %cst_15 = arith.constant 3.125000e-02 : f32
    %27 = vector.broadcast %cst_15 : f32 to vector<16x1xf32>
    %28 = arith.mulf %26, %27 : vector<16x1xf32>
    %cst_16 = arith.constant 9.99999974E-6 : f32
    %29 = vector.broadcast %cst_16 : f32 to vector<16x1xf32>
    %30 = arith.addf %28, %29 : vector<16x1xf32>
    %31 = math.rsqrt %30 : vector<16x1xf32>
    %32 = vector.broadcast %31 : vector<16x1xf32> to vector<16x128xf32>
    %33 = arith.mulf %23, %32 : vector<16x128xf32>
    %c0_17 = arith.constant 0 : index
    %c0_18 = arith.constant 0 : index
    %34 = vector.load %arg6[%c0_17, %c0_18] : memref<1x128xf32, #tpu.memory_space<vmem>>, vector<1x128xf32>
    %35 = vector.broadcast %34 : vector<1x128xf32> to vector<16x128xf32>
    %36 = arith.mulf %33, %35 : vector<16x128xf32>
    %c0_19 = arith.constant 0 : index
    %c0_20 = arith.constant 0 : index
    %37 = vector.load %arg7[%c0_19, %c0_20] : memref<1x128xf32, #tpu.memory_space<vmem>>, vector<1x128xf32>
    %38 = vector.broadcast %37 : vector<1x128xf32> to vector<16x128xf32>
    %39 = arith.addf %36, %38 : vector<16x128xf32>
    %c0_21 = arith.constant 0 : index
    %c0_22 = arith.constant 0 : index
    %40 = vector.load %arg8[%c0_21, %c0_22] : memref<16x128xf32, #tpu.memory_space<vmem>>, vector<16x128xf32>
    tpu.vector_store %arg8[%c0_21, %c0_22], %39 {strides = array<i32>} : memref<16x128xf32, #tpu.memory_space<vmem>>, vector<16x128xf32>,
    return
  }
  func.func @transform_0(%arg0: i32) -> (i32, i32) {
    %c0_i32 = arith.constant 0 : i32
    %c0_i32_0 = arith.constant 0 : i32
    return %arg0, %c0_i32 : i32, i32
  }
  func.func @transform_1(%arg0: i32) -> (i32, i32) {
    %c0_i32 = arith.constant 0 : i32
    %c0_i32_0 = arith.constant 0 : i32
    %c0_i32_1 = arith.constant 0 : i32
    return %c0_i32, %c0_i32_0 : i32, i32
  }
  func.func @transform_2(%arg0: i32) -> (i32, i32) {
    %c0_i32 = arith.constant 0 : i32
    %c0_i32_0 = arith.constant 0 : i32
    %c0_i32_1 = arith.constant 0 : i32
    return %c0_i32, %c0_i32_0 : i32, i32
  }
  func.func @transform_3(%arg0: i32) -> (i32, i32) {
    %c0_i32 = arith.constant 0 : i32
    %c0_i32_0 = arith.constant 0 : i32
    %c0_i32_1 = arith.constant 0 : i32
    return %c0_i32, %c0_i32_0 : i32, i32
  }
  func.func @transform_4(%arg0: i32) -> (i32, i32) {
    %c0_i32 = arith.constant 0 : i32
    %c0_i32_0 = arith.constant 0 : i32
    %c0_i32_1 = arith.constant 0 : i32
    return %c0_i32, %c0_i32_0 : i32, i32
  }
  func.func @transform_5(%arg0: i32) -> (i32, i32) {
    %c0_i32 = arith.constant 0 : i32
    %c0_i32_0 = arith.constant 0 : i32
    %c0_i32_1 = arith.constant 0 : i32
    return %c0_i32, %c0_i32_0 : i32, i32
  }
  func.func @transform_6(%arg0: i32) -> (i32, i32) {
    %c0_i32 = arith.constant 0 : i32
    %c0_i32_0 = arith.constant 0 : i32
    %c0_i32_1 = arith.constant 0 : i32
    return %c0_i32, %c0_i32_0 : i32, i32
  }
  func.func @transform_7(%arg0: i32) -> (i32, i32) {
    %c0_i32 = arith.constant 0 : i32
    %c0_i32_0 = arith.constant 0 : i32
    return %arg0, %c0_i32 : i32, i32
  }
}

</mosaic_0001>

<bundles_post_ra>
// kernel: tpu_custom_call.1
= control target key start
LH: loop header
LB: loop body
LE: loop exit
PB: predicated region body
PF: predicated region fallthrough
CT: control target
= control target key end

     0   :  { %12 = vsyncpa [#allocation3], 0  ;;  %s736_s0 = inlined_call_operand.hbm [shape: f32[16,128], index: 0, kind: input, shape index: {}]   ;;  %s737_s1 = inlined_call_operand.hbm [shape: f32[128,128], index: 1, kind: input, shape index: {}]   ;;  %s738_s2 = inlined_call_operand.vmem [shape: f32[1,128], index: 2, kind: input, shape index: {}]   ;;  %s739_s3 = inlined_call_operand.hbm [shape: f32[128,128], index: 3, kind: input, shape index: {}]   ;;  %s740_s4 = inlined_call_operand.vmem [shape: f32[1,128], index: 4, kind: input, shape index: {}]   ;;  %s741_s5 = inlined_call_operand.vmem [shape: f32[1,128], index: 5, kind: input, shape index: {}]   ;;  %s742_s6 = inlined_call_operand.vmem [shape: f32[1,128], index: 6, kind: input, shape index: {}]   ;;  %s743_s7 = inlined_call_operand.hbm [shape: f32[16,128], index: 7, kind: output, shape index: {}]  }
   0x1   :  { %13 = vsyncpa [#allocation6], 0 }
   0x2   :  { %14 = vsyncpa [#allocation4], 0  ;;  %s611_s24 = smov [#allocation5]   ;;  %s612_s26 = smov [#allocation2]  }
   0x3   :  { %s32_s25 = sshll.u32 %s611_s24, 4  ;;  %s20_s27 = sshll.u32 %s612_s26, 4  ;;  %s33_s25 = int_to_ptr.vmem [resolvable:$true] %s32_s25  ;;  %s657_s27 = int_to_ptr.vmem [resolvable:$true] %s20_s27 }
   0x4   :  { %s517_s30 = scalar_lea.hbm %s737_s1, 2048 }
   0x5   :  { %p518_p0 = scmp.ne.s32.totalorder %s737_s1, %s517_s30  ;;  %p521_p1 = scmp.lt.u32.totalorder %s517_s30, %s737_s1 }
   0x7   :  { %p523_p2 = pnand %p521_p1, %p518_p0 }
   0x9   :  { %526 = shalt.err (!%p523_p2)
}
   0xa   :  { %s527_s12 = scalar_lea.vmem %s33_s25, 2048  ;;  %p532_p4 = scmp.lt.s32.totalorder %s33_s25, %s33_s25 }
   0xb   :  { %p528_p3 = scmp.ne.s32.totalorder %s33_s25, %s527_s12  ;;  %p533_p5 = scmp.lt.s32.totalorder %s527_s12, %s527_s12 }
   0xd   :  { %p534_p6 = por %p533_p5, %p532_p4 }
   0xf   :  { %p535_p7 = pnand %p534_p6, %p528_p3 }
  0x11   :  { %538 = shalt.err (!%p535_p7)
}
  0x12   :  { %s613_s13 = smov 128   ;;  %s614_s14 = smov 8  }
  0x13   :  { %38 = dma.hbm_to_vmem [thread:$0]  %s737_s1, 2048, %s33_s25, [#allocation6], %s613_s13, %s613_s13, %s614_s14  }
  0x14   :  { %s539_s19 = scalar_lea.hbm %s736_s0, 256 }
  0x15   :  { %p540_p8 = scmp.ne.s32.totalorder %s736_s0, %s539_s19  ;;  %p543_p9 = scmp.lt.u32.totalorder %s539_s19, %s736_s0 }
  0x17   :  { %p545_p10 = pnand %p543_p9, %p540_p8 }
  0x19   :  { %548 = shalt.err (!%p545_p10)
}
  0x1a   :  { %s549_s24 = scalar_lea.vmem %s657_s27, 256  ;;  %p554_p12 = scmp.lt.s32.totalorder %s657_s27, %s657_s27 }
  0x1b   :  { %p550_p11 = scmp.ne.s32.totalorder %s657_s27, %s549_s24  ;;  %p555_p13 = scmp.lt.s32.totalorder %s549_s24, %s549_s24 }
  0x1d   :  { %p556_p0 = por %p555_p13, %p554_p12 }
  0x1f   :  { %p557_p1 = pnand %p556_p0, %p550_p11 }
  0x21   :  { %560 = shalt.err (!%p557_p1)
}
  0x22   :  { %26 = dma.hbm_to_vmem [thread:$0]  %s736_s0, 256, %s657_s27, [#allocation3], %s613_s13, %s613_s13, %s614_s14  }
  0x23   :  { %s615_s26 = smov [#allocation7]   ;;  %s561_s8 = scalar_lea.hbm %s739_s3, 2048 }
  0x24   :  { %s46_s28 = sshll.u32 %s615_s26, 4  ;;  %p562_p2 = scmp.ne.s32.totalorder %s739_s3, %s561_s8  ;;  %s47_s28 = int_to_ptr.vmem [resolvable:$true] %s46_s28 }
  0x25   :  { %p565_p3 = scmp.lt.u32.totalorder %s561_s8, %s739_s3 }
  0x27   :  { %p567_p4 = pnand %p565_p3, %p562_p2 }
  0x29   :  { %570 = shalt.err (!%p567_p4)
}
  0x2a   :  { %s571_s15 = scalar_lea.vmem %s47_s28, 2048  ;;  %p576_p6 = scmp.lt.s32.totalorder %s47_s28, %s47_s28 }
  0x2b   :  { %p572_p5 = scmp.ne.s32.totalorder %s47_s28, %s571_s15  ;;  %p577_p7 = scmp.lt.s32.totalorder %s571_s15, %s571_s15 }
  0x2d   :  { %p578_p8 = por %p577_p7, %p576_p6 }
  0x2f   :  { %p579_p9 = pnand %p578_p8, %p572_p5 }
  0x31   :  { %582 = shalt.err (!%p579_p9)
}
  0x32   :  { %52 = dma.hbm_to_vmem [thread:$0]  %s739_s3, 2048, %s47_s28, [#allocation6], %s613_s13, %s613_s13, %s614_s14  }
  0x33   :  { %605 = dma.done.wait [#allocation3], 256  }
  0x34   :  { %606 = vsyncadd [#allocation3], 4294967040 }
  0x35   :  { %607 = dma.done.wait [#allocation6], 4096  }
  0x36   :  { %608 = vsyncadd [#allocation6], 4294963200  ;;  %v70_v0 = vld [vmem:[#allocation5] sm:$0xff]  ;;  %v71_v1 = vld [vmem:[#allocation5 + $0x8] sm:$0xff]  ;;  %v276_v62 = vlaneseq  ;;  %s616_s21 = smov [#allocation8]  }
  0x37   :  { %v72_v2 = vld [vmem:[#allocation5 + $0x10] sm:$0xff]  ;;  %v443_v3 = vpack.c.bf16 %v71_v1, %v70_v0  ;;  %v73_v4 = vld [vmem:[#allocation5 + $0x18] sm:$0xff]  ;;  %v74_v6 = vld [vmem:[#allocation5 + $0x20] sm:$0xff]  ;;  %s320_s22 = sshll.u32 %s616_s21, 4  ;;  %s321_s22 = int_to_ptr.vmem [resolvable:$true] %s320_s22 }
  0x38   :  { %v447_v5 = vpack.c.bf16 %v73_v4, %v72_v2  ;;  %v75_v7 = vld [vmem:[#allocation5 + $0x28] sm:$0xff]  ;;  %v76_v9 = vld [vmem:[#allocation5 + $0x30] sm:$0xff]  ;;  %v77_v10 = vld [vmem:[#allocation5 + $0x38] sm:$0xff]  ;;  %v277_v63 = vand.u32 127, %v276_v62  ;;  %s583_s23 = scalar_lea.vmem %s321_s22, 256  ;;  %p588_p11 = scmp.lt.s32.totalorder %s321_s22, %s321_s22 }
  0x39   :  { %444 = vmatprep.subr.bf16.mxu0 %v443_v3  ;;  %v451_v8 = vpack.c.bf16 %v75_v7, %v74_v6  ;;  %v68_v11 = vld [vmem:[#allocation2] sm:$0xff]  ;;  %v170_v12 = vld [vmem:[#allocation7] sm:$0xff]  ;;  %v171_v13 = vld [vmem:[#allocation7 + $0x8] sm:$0xff]  ;;  %v455_v20 = vpack.c.bf16 %v77_v10, %v76_v9  ;;  %p584_p10 = scmp.ne.s32.totalorder %s321_s22, %s583_s23  ;;  %p589_p12 = scmp.lt.s32.totalorder %s583_s23, %s583_s23 }
  0x3a   :  { %446 = vmatpush3.bf16.msra.mxu0 %v443_v3  ;;  %405 = vmatprep.mubr.f32.mxu0 %v68_v11  ;;  %v172_v14 = vld [vmem:[#allocation7 + $0x10] sm:$0xff]  ;;  %v475_v15 = vpack.c.bf16 %v171_v13, %v170_v12  ;;  %v173_v16 = vld [vmem:[#allocation7 + $0x18] sm:$0xff]  ;;  %v174_v18 = vld [vmem:[#allocation7 + $0x20] sm:$0xff]  ;;  %vm278_vm0 = vcmp.lt.s32.totalorder %v277_v63, 32 }
  0x3b   :  { %448 = vmatprep.subr.bf16.mxu0 %v447_v5  ;;  %v479_v17 = vpack.c.bf16 %v173_v16, %v172_v14  ;;  %v175_v19 = vld [vmem:[#allocation7 + $0x28] sm:$0xff]  ;;  %v78_v21 = vld [vmem:[#allocation5 + $0x40] sm:$0xff]  ;;  %v176_v24 = vld [vmem:[#allocation7 + $0x30] sm:$0xff]  ;;  %p590_p13 = por %p589_p12, %p588_p11 }
  0x3c   :  { %476 = vmatprep.subr.bf16.mxu1 %v475_v15  ;;  %v79_v22 = vld [vmem:[#allocation5 + $0x48] sm:$0xff]  ;;  %v483_v23 = vpack.c.bf16 %v175_v19, %v174_v18  ;;  %v177_v25 = vld [vmem:[#allocation7 + $0x38] sm:$0xff]  ;;  %v80_v27 = vld [vmem:[#allocation5 + $0x50] sm:$0xff] }
  0x3d   :  { %478 = vmatpush3.bf16.msra.mxu1 %v475_v15  ;;  %v459_v26 = vpack.c.bf16 %v79_v22, %v78_v21  ;;  %v81_v28 = vld [vmem:[#allocation5 + $0x58] sm:$0xff]  ;;  %v487_v29 = vpack.c.bf16 %v177_v25, %v176_v24  ;;  %v178_v30 = vld [vmem:[#allocation7 + $0x40] sm:$0xff]  ;;  %v179_v31 = vld [vmem:[#allocation7 + $0x48] sm:$0xff]  ;;  %p591_p0 = pnand %p590_p13, %p584_p10 }
  0x3e   :  { %450 = vmatpush3.bf16.msra.mxu0 %v447_v5  ;;  %480 = vmatprep.subr.bf16.mxu1 %v479_v17  ;;  %v463_v32 = vpack.c.bf16 %v81_v28, %v80_v27  ;;  %v82_v33 = vld [vmem:[#allocation5 + $0x60] sm:$0xff]  ;;  %v83_v34 = vld [vmem:[#allocation5 + $0x68] sm:$0xff]  ;;  %v491_v35 = vpack.c.bf16 %v179_v31, %v178_v30  ;;  %v180_v36 = vld [vmem:[#allocation7 + $0x50] sm:$0xff] }
  0x3f   :  { %452 = vmatprep.subr.bf16.mxu0 %v451_v8  ;;  %v181_v37 = vld [vmem:[#allocation7 + $0x58] sm:$0xff]  ;;  %v467_v38 = vpack.c.bf16 %v83_v34, %v82_v33  ;;  %v84_v39 = vld [vmem:[#allocation5 + $0x70] sm:$0xff]  ;;  %v182_v42 = vld [vmem:[#allocation7 + $0x60] sm:$0xff] }
  0x40   :  { %v85_v40 = vld [vmem:[#allocation5 + $0x78] sm:$0xff]  ;;  %v495_v41 = vpack.c.bf16 %v181_v37, %v180_v36  ;;  %v183_v43 = vld [vmem:[#allocation7 + $0x68] sm:$0xff]  ;;  %v184_v47 = vld [vmem:[#allocation7 + $0x70] sm:$0xff] }
  0x41   :  { %482 = vmatpush3.bf16.msra.mxu1 %v479_v17  ;;  %v471_v44 = vpack.c.bf16 %v85_v40, %v84_v39  ;;  %v499_v45 = vpack.c.bf16 %v183_v43, %v182_v42  ;;  %v69_v46 = vld [vmem:[#allocation2 + $0x8] sm:$0xff]  ;;  %v333_v50 = vld [vmem:[%s738_s2] ss:$0 sm:$0xff] }
  0x42   :  { %454 = vmatpush3.bf16.msra.mxu0 %v451_v8  ;;  %484 = vmatprep.subr.bf16.mxu1 %v483_v23  ;;  %v185_v48 = vld [vmem:[#allocation7 + $0x78] sm:$0xff]  ;;  %v334_v57 = vld [vmem:[%s740_s4] ss:$0 sm:$0xff] }
  0x43   :  { %456 = vmatprep.subr.bf16.mxu0 %v455_v20  ;;  %v503_v49 = vpack.c.bf16 %v185_v48, %v184_v47  ;;  %v335_v17 = vld [vmem:[%s741_s5] ss:$0 sm:$0xff] }
  0x44   :  { %v336_v19 = vld [vmem:[%s742_s6] ss:$0 sm:$0xff] }
  0x45   :  { %486 = vmatpush3.bf16.msra.mxu1 %v483_v23 }
  0x46   :  { %458 = vmatpush3.bf16.msra.mxu0 %v455_v20  ;;  %488 = vmatprep.subr.bf16.mxu1 %v487_v29 }
  0x47   :  { %460 = vmatprep.subr.bf16.mxu0 %v459_v26 }
  0x49   :  { %490 = vmatpush3.bf16.msra.mxu1 %v487_v29 }
  0x4a   :  { %462 = vmatpush3.bf16.msra.mxu0 %v459_v26  ;;  %492 = vmatprep.subr.bf16.mxu1 %v491_v35 }
  0x4b   :  { %464 = vmatprep.subr.bf16.mxu0 %v463_v32 }
  0x4d   :  { %494 = vmatpush3.bf16.msra.mxu1 %v491_v35 }
  0x4e   :  { %466 = vmatpush3.bf16.msra.mxu0 %v463_v32  ;;  %496 = vmatprep.subr.bf16.mxu1 %v495_v41 }
  0x4f   :  { %468 = vmatprep.subr.bf16.mxu0 %v467_v38 }
  0x51   :  { %498 = vmatpush3.bf16.msra.mxu1 %v495_v41 }
  0x52   :  { %470 = vmatpush3.bf16.msra.mxu0 %v467_v38  ;;  %500 = vmatprep.subr.bf16.mxu1 %v499_v45 }
  0x53   :  { %472 = vmatprep.subr.bf16.mxu0 %v471_v44 }
  0x55   :  { %502 = vmatpush3.bf16.msra.mxu1 %v499_v45 }
  0x56   :  { %474 = vmatpush3.bf16.msra.mxu0 %v471_v44  ;;  %504 = vmatprep.subr.bf16.mxu1 %v503_v49 }
  0x59   :  { %406 = vmatmul.mubr.f32.vlgmr.msra.gmra.mrb[0].mxu0 %v69_v46  ;;  %506 = vmatpush3.bf16.msra.mxu1 %v503_v49 }
 0x12c   :  { %v407_v51 = vpop.f32.mrb[0].mxu0 }
 0x12d   :  { %v165_v52 = vadd.f32 %v407_v51, %v333_v50  ;;  %v159_v53 = vpop.f32.mrb[1].mxu0 }
 0x12e   :  { %v160_v54 = vadd.f32 %v333_v50, %v159_v53 }
 0x12f   :  { %v169_v56 = vmax.f32 %v165_v52, 0.0 }
 0x130   :  { %v168_v55 = vmax.f32 %v160_v54, 0.0 }
 0x132   :  { %440 = vmatprep.mubr.f32.mxu1 %v168_v55 }
 0x133   :  { %441 = vmatmul.mubr.f32.vlgmr.msra.gmra.mrb[0].mxu1 %v169_v56 }
 0x206   :  { %v442_v58 = vpop.f32.mrb[0].mxu1 }
 0x207   :  { %v259_v59 = vpop.f32.mrb[1].mxu1  ;;  %v265_v61 = vadd.f32 %v442_v58, %v334_v57 }
 0x208   :  { %v260_v60 = vadd.f32 %v334_v57, %v259_v59 }
 0x20a   :  { %268 = vadd.xlane.f32.xlu0 %v260_v60 }
 0x20e   :  { %270 = vadd.xlane.f32.xlu0 %v265_v61 }
 0x297   :  { %v269_v0 = vpop.xlane.xlu0 %268 }
 0x298   :  { %v272_v1 = vmul.f32 0.03125, %v269_v0 }
 0x29a   :  { %v274_v2 = vsub.f32 %v260_v60, %v272_v1 }
 0x29b   :  { %v271_v3 = vpop.xlane.xlu0 %270 }
 0x29c   :  { %v273_v4 = vmul.f32 0.03125, %v271_v3  ;;  %v279_v5 = vsel %vm278_vm0, %v274_v2, 0.0 }
 0x29d   :  { %v281_v6 = vmul.f32 %v279_v5, %v279_v5 }
 0x29e   :  { %v275_v7 = vsub.f32 %v265_v61, %v273_v4 }
 0x29f   :  { %283 = vadd.xlane.f32.xlu1 %v281_v6 }
 0x2a0   :  { %v280_v8 = vsel %vm278_vm0, %v275_v7, 0.0 }
 0x2a1   :  { %v282_v9 = vmul.f32 %v280_v8, %v280_v8 }
 0x2a3   :  { %285 = vadd.xlane.f32.xlu1 %v282_v9 }
 0x32c   :  { %v284_v10 = vpop.xlane.xlu1 %283 }
 0x32d   :  { %v287_v11 = vmul.f32 0.03125, %v284_v10 }
 0x32f   :  { %v289_v12 = vadd.f32 1e-05, %v287_v11 }
 0x330   :  { %v286_v13 = vpop.xlane.xlu1 %285 }
 0x331   :  { %513 = vrsqrt.f32 %v289_v12  ;;  %v288_v14 = vmul.f32 0.03125, %v286_v13 }
 0x333   :  { %v290_v15 = vadd.f32 1e-05, %v288_v14 }
 0x335   :  { %515 = vrsqrt.f32 %v290_v15 }
 0x33b   :  { %v514_v16 = vpop.eup %513 }
 0x33c   :  { %v293_v18 = vmul.f32 %v514_v16, %v279_v5 }
 0x33e   :  { %v302_v20 = vmul.f32 %v335_v17, %v293_v18 }
 0x33f   :  { %v516_v21 = vpop.eup %515 }
 0x340   :  { %v294_v22 = vmul.f32 %v516_v21, %v280_v8  ;;  %v311_v23 = vadd.f32 %v336_v19, %v302_v20 }
 0x342   :  { %v303_v24 = vmul.f32 %v335_v17, %v294_v22  ;;  %313 = vst [vmem:[#allocation8] sm:$0xff] %v311_v23 }
 0x344   :  { %v312_v25 = vadd.f32 %v336_v19, %v303_v24 }
 0x346   :  { %314 = vst [vmem:[#allocation8 + $0x8] sm:$0xff] %v312_v25 }
 0x347   :  { %594 = shalt.err (!%p591_p0)
}
 0x348   :  { %s595_s24 = scalar_lea.hbm %s743_s7, 256 }
 0x349   :  { %p596_p1 = scmp.ne.s32.totalorder %s743_s7, %s595_s24  ;;  %p599_p2 = scmp.lt.u32.totalorder %s595_s24, %s743_s7 }
 0x34b   :  { %p601_p3 = pnand %p599_p2, %p596_p1 }
 0x34d   :  { %604 = shalt.err (!%p601_p3)
}
 0x34e   :  { %326 = dma.vmem_to_hbm [thread:$0]  %s321_s22, 256, %s743_s7, [#allocation4], %s613_s13, %s613_s13, %s614_s14  }
 0x34f   :  { %609 = dma.done.wait [#allocation4], 256  }
 0x350   :  { %610 = vsyncadd [#allocation4], 4294967040 }
 0x351   :  { %330 = vsyncpa [#allocation3], 1 }
 0x352   :  { %331 = vsyncpa [#allocation6], 1 }
 0x353   :  { %332 = vsyncpa [#allocation4], 1 }

// kernel: tpu_custom_call.1
= control target key start
LH: loop header
LB: loop body
LE: loop exit
PB: predicated region body
PF: predicated region fallthrough
CT: control target
= control target key end

     0   :  { %12 = vsyncpa [#allocation3], 0  ;;  %s736_s0 = inlined_call_operand.hbm [shape: f32[16,128], index: 0, kind: input, shape index: {}]   ;;  %s737_s1 = inlined_call_operand.hbm [shape: f32[128,128], index: 1, kind: input, shape index: {}]   ;;  %s738_s2 = inlined_call_operand.vmem [shape: f32[1,128], index: 2, kind: input, shape index: {}]   ;;  %s739_s3 = inlined_call_operand.hbm [shape: f32[128,128], index: 3, kind: input, shape index: {}]   ;;  %s740_s4 = inlined_call_operand.vmem [shape: f32[1,128], index: 4, kind: input, shape index: {}]   ;;  %s741_s5 = inlined_call_operand.vmem [shape: f32[1,128], index: 5, kind: input, shape index: {}]   ;;  %s742_s6 = inlined_call_operand.vmem [shape: f32[1,128], index: 6, kind: input, shape index: {}]   ;;  %s743_s7 = inlined_call_operand.hbm [shape: f32[16,128], index: 7, kind: output, shape index: {}]  }
   0x1   :  { %13 = vsyncpa [#allocation6], 0 }
   0x2   :  { %14 = vsyncpa [#allocation4], 0  ;;  %s611_s24 = smov [#allocation5]   ;;  %s612_s26 = smov [#allocation2]  }
   0x3   :  { %s32_s25 = sshll.u32 %s611_s24, 4  ;;  %s20_s27 = sshll.u32 %s612_s26, 4  ;;  %s33_s25 = int_to_ptr.vmem [resolvable:$true] %s32_s25  ;;  %s657_s27 = int_to_ptr.vmem [resolvable:$true] %s20_s27 }
   0x4   :  { %s517_s30 = scalar_lea.hbm %s737_s1, 2048 }
   0x5   :  { %p518_p0 = scmp.ne.s32.totalorder %s737_s1, %s517_s30  ;;  %p521_p1 = scmp.lt.u32.totalorder %s517_s30, %s737_s1 }
   0x7   :  { %p523_p2 = pnand %p521_p1, %p518_p0 }
   0x9   :  { %526 = shalt.err (!%p523_p2)
}
   0xa   :  { %s527_s12 = scalar_lea.vmem %s33_s25, 2048  ;;  %p532_p4 = scmp.lt.s32.totalorder %s33_s25, %s33_s25 }
   0xb   :  { %p528_p3 = scmp.ne.s32.totalorder %s33_s25, %s527_s12  ;;  %p533_p5 = scmp.lt.s32.totalorder %s527_s12, %s527_s12 }
   0xd   :  { %p534_p6 = por %p533_p5, %p532_p4 }
   0xf   :  { %p535_p7 = pnand %p534_p6, %p528_p3 }
  0x11   :  { %538 = shalt.err (!%p535_p7)
}
  0x12   :  { %s613_s13 = smov 128   ;;  %s614_s14 = smov 8  }
  0x13   :  { %38 = dma.hbm_to_vmem [thread:$0]  %s737_s1, 2048, %s33_s25, [#allocation6], %s613_s13, %s613_s13, %s614_s14  }
  0x14   :  { %s539_s19 = scalar_lea.hbm %s736_s0, 256 }
  0x15   :  { %p540_p8 = scmp.ne.s32.totalorder %s736_s0, %s539_s19  ;;  %p543_p9 = scmp.lt.u32.totalorder %s539_s19, %s736_s0 }
  0x17   :  { %p545_p10 = pnand %p543_p9, %p540_p8 }
  0x19   :  { %548 = shalt.err (!%p545_p10)
}
  0x1a   :  { %s549_s24 = scalar_lea.vmem %s657_s27, 256  ;;  %p554_p12 = scmp.lt.s32.totalorder %s657_s27, %s657_s27 }
  0x1b   :  { %p550_p11 = scmp.ne.s32.totalorder %s657_s27, %s549_s24  ;;  %p555_p13 = scmp.lt.s32.totalorder %s549_s24, %s549_s24 }
  0x1d   :  { %p556_p0 = por %p555_p13, %p554_p12 }
  0x1f   :  { %p557_p1 = pnand %p556_p0, %p550_p11 }
  0x21   :  { %560 = shalt.err (!%p557_p1)
}
  0x22   :  { %26 = dma.hbm_to_vmem [thread:$0]  %s736_s0, 256, %s657_s27, [#allocation3], %s613_s13, %s613_s13, %s614_s14  }
  0x23   :  { %s615_s26 = smov [#allocation7]   ;;  %s561_s8 = scalar_lea.hbm %s739_s3, 2048 }
  0x24   :  { %s46_s28 = sshll.u32 %s615_s26, 4  ;;  %p562_p2 = scmp.ne.s32.totalorder %s739_s3, %s561_s8  ;;  %s47_s28 = int_to_ptr.vmem [resolvable:$true] %s46_s28 }
  0x25   :  { %p565_p3 = scmp.lt.u32.totalorder %s561_s8, %s739_s3 }
  0x27   :  { %p567_p4 = pnand %p565_p3, %p562_p2 }
  0x29   :  { %570 = shalt.err (!%p567_p4)
}
  0x2a   :  { %s571_s15 = scalar_lea.vmem %s47_s28, 2048  ;;  %p576_p6 = scmp.lt.s32.totalorder %s47_s28, %s47_s28 }
  0x2b   :  { %p572_p5 = scmp.ne.s32.totalorder %s47_s28, %s571_s15  ;;  %p577_p7 = scmp.lt.s32.totalorder %s571_s15, %s571_s15 }
  0x2d   :  { %p578_p8 = por %p577_p7, %p576_p6 }
  0x2f   :  { %p579_p9 = pnand %p578_p8, %p572_p5 }
  0x31   :  { %582 = shalt.err (!%p579_p9)
}
  0x32   :  { %52 = dma.hbm_to_vmem [thread:$0]  %s739_s3, 2048, %s47_s28, [#allocation6], %s613_s13, %s613_s13, %s614_s14  }
  0x33   :  { %605 = dma.done.wait [#allocation3], 256  }
  0x34   :  { %606 = vsyncadd [#allocation3], 4294967040 }
  0x35   :  { %607 = dma.done.wait [#allocation6], 4096  }
  0x36   :  { %608 = vsyncadd [#allocation6], 4294963200  ;;  %v70_v0 = vld [vmem:[#allocation5] sm:$0xff]  ;;  %v71_v1 = vld [vmem:[#allocation5 + $0x8] sm:$0xff]  ;;  %v276_v62 = vlaneseq  ;;  %s616_s21 = smov [#allocation8]  }
  0x37   :  { %v72_v2 = vld [vmem:[#allocation5 + $0x10] sm:$0xff]  ;;  %v443_v3 = vpack.c.bf16 %v71_v1, %v70_v0  ;;  %v73_v4 = vld [vmem:[#allocation5 + $0x18] sm:$0xff]  ;;  %v74_v6 = vld [vmem:[#allocation5 + $0x20] sm:$0xff]  ;;  %s320_s22 = sshll.u32 %s616_s21, 4  ;;  %s321_s22 = int_to_ptr.vmem [resolvable:$true] %s320_s22 }
  0x38   :  { %v447_v5 = vpack.c.bf16 %v73_v4, %v72_v2  ;;  %v75_v7 = vld [vmem:[#allocation5 + $0x28] sm:$0xff]  ;;  %v76_v9 = vld [vmem:[#allocation5 + $0x30] sm:$0xff]  ;;  %v77_v10 = vld [vmem:[#allocation5 + $0x38] sm:$0xff]  ;;  %v277_v63 = vand.u32 127, %v276_v62  ;;  %s583_s23 = scalar_lea.vmem %s321_s22, 256  ;;  %p588_p11 = scmp.lt.s32.totalorder %s321_s22, %s321_s22 }
  0x39   :  { %444 = vmatprep.subr.bf16.mxu0 %v443_v3  ;;  %v451_v8 = vpack.c.bf16 %v75_v7, %v74_v6  ;;  %v68_v11 = vld [vmem:[#allocation2] sm:$0xff]  ;;  %v170_v12 = vld [vmem:[#allocation7] sm:$0xff]  ;;  %v171_v13 = vld [vmem:[#allocation7 + $0x8] sm:$0xff]  ;;  %v455_v20 = vpack.c.bf16 %v77_v10, %v76_v9  ;;  %p584_p10 = scmp.ne.s32.totalorder %s321_s22, %s583_s23  ;;  %p589_p12 = scmp.lt.s32.totalorder %s583_s23, %s583_s23 }
  0x3a   :  { %446 = vmatpush3.bf16.msra.mxu0 %v443_v3  ;;  %405 = vmatprep.mubr.f32.mxu0 %v68_v11  ;;  %v172_v14 = vld [vmem:[#allocation7 + $0x10] sm:$0xff]  ;;  %v475_v15 = vpack.c.bf16 %v171_v13, %v170_v12  ;;  %v173_v16 = vld [vmem:[#allocation7 + $0x18] sm:$0xff]  ;;  %v174_v18 = vld [vmem:[#allocation7 + $0x20] sm:$0xff]  ;;  %vm278_vm0 = vcmp.lt.s32.totalorder %v277_v63, 32 }
  0x3b   :  { %448 = vmatprep.subr.bf16.mxu0 %v447_v5  ;;  %v479_v17 = vpack.c.bf16 %v173_v16, %v172_v14  ;;  %v175_v19 = vld [vmem:[#allocation7 + $0x28] sm:$0xff]  ;;  %v78_v21 = vld [vmem:[#allocation5 + $0x40] sm:$0xff]  ;;  %v176_v24 = vld [vmem:[#allocation7 + $0x30] sm:$0xff]  ;;  %p590_p13 = por %p589_p12, %p588_p11 }
  0x3c   :  { %476 = vmatprep.subr.bf16.mxu1 %v475_v15  ;;  %v79_v22 = vld [vmem:[#allocation5 + $0x48] sm:$0xff]  ;;  %v483_v23 = vpack.c.bf16 %v175_v19, %v174_v18  ;;  %v177_v25 = vld [vmem:[#allocation7 + $0x38] sm:$0xff]  ;;  %v80_v27 = vld [vmem:[#allocation5 + $0x50] sm:$0xff] }
  0x3d   :  { %478 = vmatpush3.bf16.msra.mxu1 %v475_v15  ;;  %v459_v26 = vpack.c.bf16 %v79_v22, %v78_v21  ;;  %v81_v28 = vld [vmem:[#allocation5 + $0x58] sm:$0xff]  ;;  %v487_v29 = vpack.c.bf16 %v177_v25, %v176_v24  ;;  %v178_v30 = vld [vmem:[#allocation7 + $0x40] sm:$0xff]  ;;  %v179_v31 = vld [vmem:[#allocation7 + $0x48] sm:$0xff]  ;;  %p591_p0 = pnand %p590_p13, %p584_p10 }
  0x3e   :  { %450 = vmatpush3.bf16.msra.mxu0 %v447_v5  ;;  %480 = vmatprep.subr.bf16.mxu1 %v479_v17  ;;  %v463_v32 = vpack.c.bf16 %v81_v28, %v80_v27  ;;  %v82_v33 = vld [vmem:[#allocation5 + $0x60] sm:$0xff]  ;;  %v83_v34 = vld [vmem:[#allocation5 + $0x68] sm:$0xff]  ;;  %v491_v35 = vpack.c.bf16 %v179_v31, %v178_v30  ;;  %v180_v36 = vld [vmem:[#allocation7 + $0x50] sm:$0xff] }
  0x3f   :  { %452 = vmatprep.subr.bf16.mxu0 %v451_v8  ;;  %v181_v37 = vld [vmem:[#allocation7 + $0x58] sm:$0xff]  ;;  %v467_v38 = vpack.c.bf16 %v83_v34, %v82_v33  ;;  %v84_v39 = vld [vmem:[#allocation5 + $0x70] sm:$0xff]  ;;  %v182_v42 = vld [vmem:[#allocation7 + $0x60] sm:$0xff] }
  0x40   :  { %v85_v40 = vld [vmem:[#allocation5 + $0x78] sm:$0xff]  ;;  %v495_v41 = vpack.c.bf16 %v181_v37, %v180_v36  ;;  %v183_v43 = vld [vmem:[#allocation7 + $0x68] sm:$0xff]  ;;  %v184_v47 = vld [vmem:[#allocation7 + $0x70] sm:$0xff] }
  0x41   :  { %482 = vmatpush3.bf16.msra.mxu1 %v479_v17  ;;  %v471_v44 = vpack.c.bf16 %v85_v40, %v84_v39  ;;  %v499_v45 = vpack.c.bf16 %v183_v43, %v182_v42  ;;  %v69_v46 = vld [vmem:[#allocation2 + $0x8] sm:$0xff]  ;;  %v333_v50 = vld [vmem:[%s738_s2] ss:$0 sm:$0xff] }
  0x42   :  { %454 = vmatpush3.bf16.msra.mxu0 %v451_v8  ;;  %484 = vmatprep.subr.bf16.mxu1 %v483_v23  ;;  %v185_v48 = vld [vmem:[#allocation7 + $0x78] sm:$0xff]  ;;  %v334_v57 = vld [vmem:[%s740_s4] ss:$0 sm:$0xff] }
  0x43   :  { %456 = vmatprep.subr.bf16.mxu0 %v455_v20  ;;  %v503_v49 = vpack.c.bf16 %v185_v48, %v184_v47  ;;  %v335_v17 = vld [vmem:[%s741_s5] ss:$0 sm:$0xff] }
  0x44   :  { %v336_v19 = vld [vmem:[%s742_s6] ss:$0 sm:$0xff] }
  0x45   :  { %486 = vmatpush3.bf16.msra.mxu1 %v483_v23 }
  0x46   :  { %458 = vmatpush3.bf16.msra.mxu0 %v455_v20  ;;  %488 = vmatprep.subr.bf16.mxu1 %v487_v29 }
  0x47   :  { %460 = vmatprep.subr.bf16.mxu0 %v459_v26 }
  0x49   :  { %490 = vmatpush3.bf16.msra.mxu1 %v487_v29 }
  0x4a   :  { %462 = vmatpush3.bf16.msra.mxu0 %v459_v26  ;;  %492 = vmatprep.subr.bf16.mxu1 %v491_v35 }
  0x4b   :  { %464 = vmatprep.subr.bf16.mxu0 %v463_v32 }
  0x4d   :  { %494 = vmatpush3.bf16.msra.mxu1 %v491_v35 }
  0x4e   :  { %466 = vmatpush3.bf16.msra.mxu0 %v463_v32  ;;  %496 = vmatprep.subr.bf16.mxu1 %v495_v41 }
  0x4f   :  { %468 = vmatprep.subr.bf16.mxu0 %v467_v38 }
  0x51   :  { %498 = vmatpush3.bf16.msra.mxu1 %v495_v41 }
  0x52   :  { %470 = vmatpush3.bf16.msra.mxu0 %v467_v38  ;;  %500 = vmatprep.subr.bf16.mxu1 %v499_v45 }
  0x53   :  { %472 = vmatprep.subr.bf16.mxu0 %v471_v44 }
  0x55   :  { %502 = vmatpush3.bf16.msra.mxu1 %v499_v45 }
  0x56   :  { %474 = vmatpush3.bf16.msra.mxu0 %v471_v44  ;;  %504 = vmatprep.subr.bf16.mxu1 %v503_v49 }
  0x59   :  { %406 = vmatmul.mubr.f32.vlgmr.msra.gmra.mrb[0].mxu0 %v69_v46  ;;  %506 = vmatpush3.bf16.msra.mxu1 %v503_v49 }
 0x12c   :  { %v407_v51 = vpop.f32.mrb[0].mxu0 }
 0x12d   :  { %v165_v52 = vadd.f32 %v407_v51, %v333_v50  ;;  %v159_v53 = vpop.f32.mrb[1].mxu0 }
 0x12e   :  { %v160_v54 = vadd.f32 %v333_v50, %v159_v53 }
 0x12f   :  { %v169_v56 = vmax.f32 %v165_v52, 0.0 }
 0x130   :  { %v168_v55 = vmax.f32 %v160_v54, 0.0 }
 0x132   :  { %440 = vmatprep.mubr.f32.mxu1 %v168_v55 }
 0x133   :  { %441 = vmatmul.mubr.f32.vlgmr.msra.gmra.mrb[0].mxu1 %v169_v56 }
 0x206   :  { %v442_v58 = vpop.f32.mrb[0].mxu1 }
 0x207   :  { %v259_v59 = vpop.f32.mrb[1].mxu1  ;;  %v265_v61 = vadd.f32 %v442_v58, %v334_v57 }
 0x208   :  { %v260_v60 = vadd.f32 %v334_v57, %v259_v59 }
 0x20a   :  { %268 = vadd.xlane.f32.xlu0 %v260_v60 }
 0x20e   :  { %270 = vadd.xlane.f32.xlu0 %v265_v61 }
 0x297   :  { %v269_v0 = vpop.xlane.xlu0 %268 }
 0x298   :  { %v272_v1 = vmul.f32 0.03125, %v269_v0 }
 0x29a   :  { %v274_v2 = vsub.f32 %v260_v60, %v272_v1 }
 0x29b   :  { %v271_v3 = vpop.xlane.xlu0 %270 }
 0x29c   :  { %v273_v4 = vmul.f32 0.03125, %v271_v3  ;;  %v279_v5 = vsel %vm278_vm0, %v274_v2, 0.0 }
 0x29d   :  { %v281_v6 = vmul.f32 %v279_v5, %v279_v5 }
 0x29e   :  { %v275_v7 = vsub.f32 %v265_v61, %v273_v4 }
 0x29f   :  { %283 = vadd.xlane.f32.xlu1 %v281_v6 }
 0x2a0   :  { %v280_v8 = vsel %vm278_vm0, %v275_v7, 0.0 }
 0x2a1   :  { %v282_v9 = vmul.f32 %v280_v8, %v280_v8 }
 0x2a3   :  { %285 = vadd.xlane.f32.xlu1 %v282_v9 }
 0x32c   :  { %v284_v10 = vpop.xlane.xlu1 %283 }
 0x32d   :  { %v287_v11 = vmul.f32 0.03125, %v284_v10 }
 0x32f   :  { %v289_v12 = vadd.f32 1e-05, %v287_v11 }
 0x330   :  { %v286_v13 = vpop.xlane.xlu1 %285 }
 0x331   :  { %513 = vrsqrt.f32 %v289_v12  ;;  %v288_v14 = vmul.f32 0.03125, %v286_v13 }
 0x333   :  { %v290_v15 = vadd.f32 1e-05, %v288_v14 }
 0x335   :  { %515 = vrsqrt.f32 %v290_v15 }
 0x33b   :  { %v514_v16 = vpop.eup %513 }
 0x33c   :  { %v293_v18 = vmul.f32 %v514_v16, %v279_v5 }
 0x33e   :  { %v302_v20 = vmul.f32 %v335_v17, %v293_v18 }
 0x33f   :  { %v516_v21 = vpop.eup %515 }
 0x340   :  { %v294_v22 = vmul.f32 %v516_v21, %v280_v8  ;;  %v311_v23 = vadd.f32 %v336_v19, %v302_v20 }
 0x342   :  { %v303_v24 = vmul.f32 %v335_v17, %v294_v22  ;;  %313 = vst [vmem:[#allocation8] sm:$0xff] %v311_v23 }
 0x344   :  { %v312_v25 = vadd.f32 %v336_v19, %v303_v24 }
 0x346   :  { %314 = vst [vmem:[#allocation8 + $0x8] sm:$0xff] %v312_v25 }
 0x347   :  { %594 = shalt.err (!%p591_p0)
}
 0x348   :  { %s595_s24 = scalar_lea.hbm %s743_s7, 256 }
 0x349   :  { %p596_p1 = scmp.ne.s32.totalorder %s743_s7, %s595_s24  ;;  %p599_p2 = scmp.lt.u32.totalorder %s595_s24, %s743_s7 }
 0x34b   :  { %p601_p3 = pnand %p599_p2, %p596_p1 }
 0x34d   :  { %604 = shalt.err (!%p601_p3)
}
 0x34e   :  { %326 = dma.vmem_to_hbm [thread:$0]  %s321_s22, 256, %s743_s7, [#allocation4], %s613_s13, %s613_s13, %s614_s14  }
 0x34f   :  { %609 = dma.done.wait [#allocation4], 256  }
 0x350   :  { %610 = vsyncadd [#allocation4], 4294967040 }
 0x351   :  { %330 = vsyncpa [#allocation3], 1 }
 0x352   :  { %331 = vsyncpa [#allocation6], 1 }
 0x353   :  { %332 = vsyncpa [#allocation4], 1 }

</bundles_post_ra>
